<compile_context>
chip_gen: v7x
topology: tpu7x:2x2x1
jax: 0.10.0
libtpu: 0.0.40
codegen_flags: <defaults>
</compile_context>

<pallas_src>
import functools

import jax
import jax.numpy as jnp
from jax import lax
from jax.experimental import pallas as pl
from jax.experimental.pallas import tpu as pltpu

# ----------------------- configuration (feature_parameters / hmm) -----------------------
SAMPLE_RATE = 16000
N_FFT = 400          # torchaudio MFCC/MelSpectrogram defaults
HOP = 200
N_MELS = 128
N_MFCC = 13          # feature_parameters['num_ceps']
LEFT_CONTEXT = 4     # feature_parameters['left_context']
RIGHT_CONTEXT = 4    # feature_parameters['right_context']
NUM_STATES = 30      # hmm.get_num_states()
TOP_DB = 80.0        # torchaudio.transforms.MFCC hard-codes top_db=80.0
INPUT_SCALE = 0.5648193359375


def _round_up(x, m):
    return (x + m - 1) // m * m


def _cdiv(a, b):
    return -(-a // b)


# Logical layer dims (match the PyTorch module).
BASE_DIM = 3 * N_MFCC                                  # 39 base channels per frame
N_CTX = LEFT_CONTEXT + 1 + RIGHT_CONTEXT               # 9 context positions
K_DIM = BASE_DIM * N_CTX                               # 351 (original layer-1 input width)
H1_DIM, H2_DIM = 200, 100
HALO = LEFT_CONTEXT + RIGHT_CONTEXT                    # 8 extra halo rows per time window

# (8,128)-aligned padded dims used inside the Pallas kernel (weights zero-padded once).
H1_PAD = _round_up(H1_DIM, 128)      # 256
H2_PAD = _round_up(H2_DIM, 128)      # 128
N_PAD = _round_up(NUM_STATES, 128)   # 128  -> lane-dense output stores


# ----------------------------- plain-JAX feature front end -----------------------------
def _hann_window(n):
    # periodic Hann (torch.hann_window default)
    return 0.5 - 0.5 * jnp.cos(2.0 * jnp.pi * jnp.arange(n, dtype=jnp.float32) / n)


def _mel_filterbank(n_freqs, f_min, f_max, n_mels, sample_rate):
    # torchaudio defaults: HTK mel scale, norm=None
    def hz_to_mel(f):
        return 2595.0 * jnp.log10(1.0 + f / 700.0)

    def mel_to_hz(m):
        return 700.0 * (jnp.power(10.0, m / 2595.0) - 1.0)

    all_freqs = jnp.linspace(0.0, sample_rate // 2, n_freqs)
    m_pts = jnp.linspace(hz_to_mel(jnp.float32(f_min)), hz_to_mel(jnp.float32(f_max)),
                         n_mels + 2)
    f_pts = mel_to_hz(m_pts)
    f_diff = f_pts[1:] - f_pts[:-1]                      # (n_mels+1,)
    slopes = f_pts[None, :] - all_freqs[:, None]         # (n_freqs, n_mels+2)
    down = -slopes[:, :-2] / f_diff[:-1]
    up = slopes[:, 2:] / f_diff[1:]
    return jnp.maximum(0.0, jnp.minimum(down, up))       # (n_freqs, n_mels)


def _power_spectrogram(x, n_fft=N_FFT, hop=HOP):
    # center=True reflect padding, power=2 (torchaudio Spectrogram defaults)
    pad = n_fft // 2
    xp = jnp.pad(x, ((0, 0), (pad, pad)), mode="reflect")
    window = _hann_window(n_fft)
    n_frames = 1 + (xp.shape[1] - n_fft) // hop
    idx = jnp.arange(n_frames)[:, None] * hop + jnp.arange(n_fft)[None, :]
    frames = xp[:, idx] * window[None, None, :]          # (B, T, n_fft)
    spec = jnp.fft.rfft(frames, n=n_fft, axis=-1)
    power = jnp.abs(spec) ** 2                           # (B, T, n_freqs)
    return jnp.transpose(power, (0, 2, 1))               # (B, n_freqs, T)


def _create_dct(n_mfcc, n_mels):
    # DCT-II, norm='ortho', returned as (n_mels, n_mfcc) like torchaudio.functional.create_dct
    n = jnp.arange(n_mels, dtype=jnp.float32)
    k = jnp.arange(n_mfcc, dtype=jnp.float32)
    dct = jnp.cos(jnp.pi / n_mels * (n[:, None] + 0.5) * k[None, :])
    dct = dct * jnp.sqrt(2.0 / n_mels)
    dct = dct.at[:, 0].multiply(1.0 / jnp.sqrt(2.0))
    return dct


def mfcc_jax(x):
    """torchaudio.transforms.MFCC(n_mfcc=N_MFCC) equivalent. x: (B, samples) -> (B, n_mfcc, T)."""
    spec = _power_spectrogram(x)                                        # (B, F, T)
    fb = _mel_filterbank(N_FFT // 2 + 1, 0.0, SAMPLE_RATE / 2.0, N_MELS, SAMPLE_RATE)
    mel = jnp.einsum("bft,fm->bmt", spec, fb)                           # (B, n_mels, T)
    # AmplitudeToDB('power', top_db=80): 10*log10(clamp(x, 1e-10)), per-sample top_db clamp
    mel_db = 10.0 * jnp.log10(jnp.maximum(mel, 1e-10))
    mel_db = jnp.maximum(mel_db, jnp.max(mel_db, axis=(-2, -1), keepdims=True) - TOP_DB)
    dct = _create_dct(N_MFCC, N_MELS)                                   # (n_mels, n_mfcc)
    return jnp.einsum("bmt,mc->bct", mel_db, dct)                       # (B, n_mfcc, T)


def compute_deltas(x, win_length=5):
    """torchaudio ComputeDeltas (replicate padding), along last axis. x: (B, C, T)."""
    n = (win_length - 1) // 2
    denom = n * (n + 1) * (2 * n + 1) / 3.0
    xp = jnp.pad(x, ((0, 0), (0, 0), (n, n)), mode="edge")
    t = x.shape[-1]
    out = jnp.zeros_like(x)
    for j in range(-n, n + 1):
        out = out + float(j) * xp[..., j + n: j + n + t]
    return out / denom


def add_context(feats, left=LEFT_CONTEXT, right=RIGHT_CONTEXT):
    """add_context_pytorch equivalent (circular roll, like the torch reference).
    Used only by the pure-JAX reference check. feats: (B, T, C) -> (B, T, C, L+1+R)."""
    parts = [jnp.roll(feats, i, axis=1) for i in range(left, 0, -1)]
    parts.append(feats)
    parts += [jnp.roll(feats, -i, axis=1) for i in range(1, right + 1)]
    return jnp.stack(parts, axis=3)


# ------------------------------------ Pallas kernel -------------------------------------
def _mlp_ctx_kernel(x_ref, *refs, penu, tile_t):
    """x_ref: (tile_t + 8, 39) f32 halo window of base features (one utterance, one time tile).
    refs = (w1c, b1, w2, b2[, w3, b3], out).  Layer-1 is accumulated as 9 shifted partial
    matmuls against the 39-row context slabs of W1, so the 9x-duplicated 351-wide context
    rows never exist in HBM (context fold)."""
    w1c_ref, b1_ref, w2_ref, b2_ref = refs[0], refs[1], refs[2], refs[3]
    o_ref = refs[-1]

    xw = x_ref[...]                                      # (tile_t + 8, 39) f32
    acc = jnp.zeros((tile_t, H1_PAD), jnp.float32)
    for j in range(N_CTX):                               # static unroll over 9 context offsets
        xj = xw[j:j + tile_t, :].astype(jnp.bfloat16)    # rows for context offset d = j - 4
        acc = acc + jnp.dot(xj, w1c_ref[j], preferred_element_type=jnp.float32)
    h1 = jnp.maximum(acc + b1_ref[...], 0.0)

    h2 = jnp.dot(h1.astype(jnp.bfloat16), w2_ref[...],
                 preferred_element_type=jnp.float32) + b2_ref[...]
    h2 = jnp.maximum(h2, 0.0)

    if penu:
        o_ref[...] = h2                                  # padded penultimate activations
    else:
        w3_ref, b3_ref = refs[4], refs[5]
        o_ref[...] = jnp.dot(h2.astype(jnp.bfloat16), w3_ref[...],
                             preferred_element_type=jnp.float32) + b3_ref[...]


def mlp_ctx_pallas(feats, pparams, *, penu=False, tile_t_max=2048):
    """feats: (B, T, 39) f32 base features (mfcc+deltas+deltadeltas).
    Returns (B, T, out_dim) f32 (out_dim = 30 logits or 100 penultimate activations)."""
    w1c, b1, w2, b2, w3, b3 = pparams
    bsz, nfrm, nch = feats.shape
    assert nch == BASE_DIM

    # Large time tiles amortize the ~0.35 us per-grid-step overhead; no forced 2-way split.
    tile_t = min(tile_t_max, _round_up(nfrm, 8))
    nt = _cdiv(nfrm, tile_t)
    t_pad = nt * tile_t
    th = tile_t + HALO                                   # always a multiple of 8

    # Single small materialization: circular halo (torch `roll` wrap semantics) + tail zeros.
    pieces = [feats[:, -LEFT_CONTEXT:], feats, feats[:, :RIGHT_CONTEXT]]
    if t_pad > nfrm:
        pieces.append(jnp.zeros((bsz, t_pad - nfrm, nch), feats.dtype))
    fh = jnp.concatenate(pieces, axis=1)                 # (B, t_pad + 8, 39)

    if nt == 1:
        wins = fh[:, None]                               # (B, 1, tile_t+8, 39) — no extra copy
    else:
        wins = jnp.stack([lax.slice_in_dim(fh, i * tile_t, i * tile_t + th, axis=1)
                          for i in range(nt)], axis=1)   # overlapping windows, tiny duplication

    # penu=True: don't pass / DMA the dead third layer at all.
    weights = (w1c, b1, w2, b2) if penu else (w1c, b1, w2, b2, w3, b3)
    weight_specs = [pl.BlockSpec(w.shape, lambda bi, ti, n=w.ndim: (0,) * n)  # resident
                    for w in weights]
    x_spec = pl.BlockSpec((None, None, th, nch), lambda bi, ti: (bi, ti, 0, 0))

    out = pl.pallas_call(
        functools.partial(_mlp_ctx_kernel, penu=penu, tile_t=tile_t),
        out_shape=jax.ShapeDtypeStruct((bsz, t_pad, N_PAD), jnp.float32),
        grid=(bsz, nt),
        in_specs=[x_spec] + weight_specs,
        out_specs=pl.BlockSpec((None, tile_t, N_PAD), lambda bi, ti: (bi, ti, 0)),
        compiler_params=pltpu.CompilerParams(
            dimension_semantics=("parallel", "parallel")),
    )(wins, *weights)

    out_dim = H2_DIM if penu else NUM_STATES
    return out[:, :nfrm, :out_dim]


# ------------------------------------- parameters ---------------------------------------
def init_params(key):
    """Deterministic Linear params (stored pre-transposed: (in, out)); biases as (1, out)."""
    dims = [(K_DIM, H1_DIM), (H1_DIM, H2_DIM), (H2_DIM, NUM_STATES)]
    params = []
    for i, (fan_in, fan_out) in enumerate(dims):
        kw, kb = jax.random.split(jax.random.fold_in(key, i))
        bound = 1.0 / jnp.sqrt(jnp.float32(fan_in))
        w = jax.random.uniform(kw, (fan_in, fan_out), jnp.float32, -bound, bound)
        b = jax.random.uniform(kb, (1, fan_out), jnp.float32, -bound, bound)
        params += [w, b]
    return tuple(params)


def prepare_params(params):
    """One-time: permute W1 into 9 context slabs of 39 rows (original row index is
    channel*9 + context_pos), zero-pad hidden/output dims to lane multiples, cast weights
    to bf16 (biases stay f32)."""
    w1, b1, w2, b2, w3, b3 = params
    w1c = w1.reshape(BASE_DIM, N_CTX, H1_DIM).transpose(1, 0, 2)        # (9, 39, 200)
    w1c = jnp.pad(w1c, ((0, 0), (0, 0), (0, H1_PAD - H1_DIM))).astype(jnp.bfloat16)
    return (
        w1c,
        jnp.pad(b1, ((0, 0), (0, H1_PAD - H1_DIM))),
        jnp.pad(w2, ((0, H1_PAD - H1_DIM), (0, H2_PAD - H2_DIM))).astype(jnp.bfloat16),
        jnp.pad(b2, ((0, 0), (0, H2_PAD - H2_DIM))),
        jnp.pad(w3, ((0, H2_PAD - H2_DIM), (0, N_PAD - NUM_STATES))).astype(jnp.bfloat16),
        jnp.pad(b3, ((0, 0), (0, N_PAD - NUM_STATES))),
    )


# ------------------------------------- full forward -------------------------------------
@functools.partial(jax.jit, static_argnames=("penu",))
def two_layer_plus_forward(x, pparams, penu=False):
    x = x / INPUT_SCALE
    mfcc = mfcc_jax(x)                                   # (B, n_mfcc, T)
    d1 = compute_deltas(mfcc)
    d2 = compute_deltas(d1)
    feats = jnp.concatenate([mfcc, d1, d2], axis=1)      # (B, 39, T)
    feats = jnp.transpose(feats, (0, 2, 1))              # (B, T, 39)
    return mlp_ctx_pallas(feats, pparams, penu=penu)     # (B, T, 30) or (B, T, 100)


@functools.partial(jax.jit, static_argnames=("penu",))
def reference_forward(x, params, penu=False):
    """Pure-JAX reference of the ORIGINAL materialized-context formulation with matched
    bf16 operand precision / f32 accumulation — used only to validate the context fold."""
    w1, b1, w2, b2, w3, b3 = params
    x = x / INPUT_SCALE
    mfcc = mfcc_jax(x)
    d1 = compute_deltas(mfcc)
    d2 = compute_deltas(d1)
    feats = jnp.transpose(jnp.concatenate([mfcc, d1, d2], axis=1), (0, 2, 1))
    ctx = add_context(feats)                             # (B, T, 39, 9)
    bsz, t = ctx.shape[0], ctx.shape[1]
    x2d = ctx.reshape(bsz, t, -1)                        # torch.flatten(..., start_dim=2)
    h1 = jnp.maximum(
        jnp.einsum("btk,kh->bth", x2d.astype(jnp.bfloat16), w1.astype(jnp.bfloat16),
                   preferred_element_type=jnp.float32) + b1, 0.0)
    h2 = jnp.maximum(
        jnp.einsum("bth,hg->btg", h1.astype(jnp.bfloat16), w2.astype(jnp.bfloat16),
                   preferred_element_type=jnp.float32) + b2, 0.0)
    if penu:
        return h2
    return jnp.einsum("btg,gs->bts", h2.astype(jnp.bfloat16), w3.astype(jnp.bfloat16),
                      preferred_element_type=jnp.float32) + b3


# --------------------------------------- main -------------------------------------------
if __name__ == "__main__":
    key = jax.random.PRNGKey(0)
    k_x, k_p = jax.random.split(key)

    batch = 2
    num_samples = 1600                                   # 0.1 s @ 16 kHz -> T = 9 frames
    x = jax.random.normal(k_x, (batch, num_samples), dtype=jnp.float32) * 0.1
    params = init_params(k_p)
    pparams = prepare_params(params)                     # permute/pad/cast once at init

    y = jax.block_until_ready(two_layer_plus_forward(x, pparams))
    expected_t = 1 + num_samples // HOP
    assert y.shape == (batch, expected_t, NUM_STATES), y.shape
    assert y.dtype == jnp.float32
    assert bool(jnp.all(jnp.isfinite(y)))

    # penu=True returns the penultimate 100-d ReLU activations.
    h2 = jax.block_until_ready(two_layer_plus_forward(x, pparams, penu=True))
    assert h2.shape == (batch, expected_t, H2_DIM), h2.shape
    assert bool(jnp.all(jnp.isfinite(h2))) and bool(jnp.all(h2 >= 0.0))

    # Validate the in-kernel context fold against the materialized-context reference
    # (same bf16 operand precision -> only tiny f32-accumulation-order differences).
    y_ref = jax.block_until_ready(reference_forward(x, params))
    h2_ref = jax.block_until_ready(reference_forward(x, params, penu=True))
    assert bool(jnp.allclose(y, y_ref, rtol=0.1, atol=0.25)), \
        float(jnp.max(jnp.abs(y - y_ref)))
    assert bool(jnp.allclose(h2, h2_ref, rtol=0.1, atol=0.25)), \
        float(jnp.max(jnp.abs(h2 - h2_ref)))

    print("KERNEL_OK")
</pallas_src>

<mosaic_0001>
module attributes {stable_mosaic.version = 11 : i64} {
  func.func private @main(%arg0: i32) attributes {dimension_semantics = [#tpu.dimension_semantics<core_parallel>], iteration_bounds = array<i64: 2>, tpu.core_type = #tpu.core_type<sc_scalar_subcore>, window_params = []} {
    return
  }
}

module attributes {stable_mosaic.version = 11 : i64} {
  func.func private @main(%arg0: i32) attributes {dimension_semantics = [#tpu.dimension_semantics<core_parallel>], iteration_bounds = array<i64: 2>, tpu.core_type = #tpu.core_type<sc_scalar_subcore>, window_params = []} {
    return
  }
}

module attributes {stable_mosaic.version = 11 : i64} {
  func.func @_mlp_ctx_kernel(%arg0: i32, %arg1: i32, %arg2: memref<1x1x24x39xf32, #tpu.memory_space<vmem>>, %arg3: memref<9x39x256xbf16, #tpu.memory_space<vmem>>, %arg4: memref<1x256xf32, #tpu.memory_space<vmem>>, %arg5: memref<256x128xbf16, #tpu.memory_space<vmem>>, %arg6: memref<1x128xf32, #tpu.memory_space<vmem>>, %arg7: memref<128x128xbf16, #tpu.memory_space<vmem>>, %arg8: memref<1x128xf32, #tpu.memory_space<vmem>>, %arg9: memref<1x16x128xf32, #tpu.memory_space<vmem>>) attributes {dimension_semantics = [#tpu.dimension_semantics<parallel>, #tpu.dimension_semantics<parallel>], iteration_bounds = array<i64: 2, 1>, scalar_prefetch = 0 : i64, scratch_operands = 0 : i64, tpu.core_type = #tpu.core_type<tc>, window_params = [{transform_indices = @transform_0, window_bounds = array<i64: 1, 1, 24, 39>}, {pipeline_mode = #tpu.pipeline_mode<synchronous>, transform_indices = @transform_1, window_bounds = array<i64: 9, 39, 256>}, {pipeline_mode = #tpu.pipeline_mode<synchronous>, transform_indices = @transform_2, window_bounds = array<i64: 1, 256>}, {pipeline_mode = #tpu.pipeline_mode<synchronous>, transform_indices = @transform_3, window_bounds = array<i64: 256, 128>}, {pipeline_mode = #tpu.pipeline_mode<synchronous>, transform_indices = @transform_4, window_bounds = array<i64: 1, 128>}, {pipeline_mode = #tpu.pipeline_mode<synchronous>, transform_indices = @transform_5, window_bounds = array<i64: 128, 128>}, {pipeline_mode = #tpu.pipeline_mode<synchronous>, transform_indices = @transform_6, window_bounds = array<i64: 1, 128>}, {transform_indices = @transform_7, window_bounds = array<i64: 1, 16, 128>}]} {
    %c0 = arith.constant 0 : index
    %c0_0 = arith.constant 0 : index
    %c0_1 = arith.constant 0 : index
    %c0_2 = arith.constant 0 : index
    %0 = vector.load %arg2[%c0, %c0_0, %c0_1, %c0_2] : memref<1x1x24x39xf32, #tpu.memory_space<vmem>>, vector<1x1x24x39xf32>
    %1 = vector.shape_cast %0 : vector<1x1x24x39xf32> to vector<24x39xf32>
    %cst = arith.constant 0.000000e+00 : f32
    %2 = vector.broadcast %cst : f32 to vector<16x256xf32>
    %3 = vector.extract_strided_slice %1 {offsets = [0, 0], sizes = [16, 39], strides = [1, 1]} : vector<24x39xf32> to vector<16x39xf32>
    %4 = arith.truncf %3 : vector<16x39xf32> to vector<16x39xbf16>
    %c0_3 = arith.constant 0 : index
    %c0_4 = arith.constant 0 : index
    %c0_5 = arith.constant 0 : index
    %5 = vector.load %arg3[%c0_3, %c0_4, %c0_5] : memref<9x39x256xbf16, #tpu.memory_space<vmem>>, vector<1x39x256xbf16>
    %6 = vector.shape_cast %5 : vector<1x39x256xbf16> to vector<39x256xbf16>
    %cst_6 = arith.constant dense<0.000000e+00> : vector<16x256xf32>
    %7 = tpu.matmul %4, %6, %cst_6 {dimension_numbers = #tpu.dot_dimension_numbers<[1], [0], [0], [1], [0, 0, 1, 1], [], []>} : vector<16x39xbf16>, vector<39x256xbf16>, vector<16x256xf32> -> vector<16x256xf32>
    %8 = arith.addf %2, %7 : vector<16x256xf32>
    %9 = vector.extract_strided_slice %1 {offsets = [1, 0], sizes = [16, 39], strides = [1, 1]} : vector<24x39xf32> to vector<16x39xf32>
    %10 = arith.truncf %9 : vector<16x39xf32> to vector<16x39xbf16>
    %c1 = arith.constant 1 : index
    %c0_7 = arith.constant 0 : index
    %c0_8 = arith.constant 0 : index
    %11 = vector.load %arg3[%c1, %c0_7, %c0_8] : memref<9x39x256xbf16, #tpu.memory_space<vmem>>, vector<1x39x256xbf16>
    %12 = vector.shape_cast %11 : vector<1x39x256xbf16> to vector<39x256xbf16>
    %cst_9 = arith.constant dense<0.000000e+00> : vector<16x256xf32>
    %13 = tpu.matmul %10, %12, %cst_9 {dimension_numbers = #tpu.dot_dimension_numbers<[1], [0], [0], [1], [0, 0, 1, 1], [], []>} : vector<16x39xbf16>, vector<39x256xbf16>, vector<16x256xf32> -> vector<16x256xf32>
    %14 = arith.addf %8, %13 : vector<16x256xf32>
    %15 = vector.extract_strided_slice %1 {offsets = [2, 0], sizes = [16, 39], strides = [1, 1]} : vector<24x39xf32> to vector<16x39xf32>
    %16 = arith.truncf %15 : vector<16x39xf32> to vector<16x39xbf16>
    %c2 = arith.constant 2 : index
    %c0_10 = arith.constant 0 : index
    %c0_11 = arith.constant 0 : index
    %17 = vector.load %arg3[%c2, %c0_10, %c0_11] : memref<9x39x256xbf16, #tpu.memory_space<vmem>>, vector<1x39x256xbf16>
    %18 = vector.shape_cast %17 : vector<1x39x256xbf16> to vector<39x256xbf16>
    %cst_12 = arith.constant dense<0.000000e+00> : vector<16x256xf32>
    %19 = tpu.matmul %16, %18, %cst_12 {dimension_numbers = #tpu.dot_dimension_numbers<[1], [0], [0], [1], [0, 0, 1, 1], [], []>} : vector<16x39xbf16>, vector<39x256xbf16>, vector<16x256xf32> -> vector<16x256xf32>
    %20 = arith.addf %14, %19 : vector<16x256xf32>
    %21 = vector.extract_strided_slice %1 {offsets = [3, 0], sizes = [16, 39], strides = [1, 1]} : vector<24x39xf32> to vector<16x39xf32>
    %22 = arith.truncf %21 : vector<16x39xf32> to vector<16x39xbf16>
    %c3 = arith.constant 3 : index
    %c0_13 = arith.constant 0 : index
    %c0_14 = arith.constant 0 : index
    %23 = vector.load %arg3[%c3, %c0_13, %c0_14] : memref<9x39x256xbf16, #tpu.memory_space<vmem>>, vector<1x39x256xbf16>
    %24 = vector.shape_cast %23 : vector<1x39x256xbf16> to vector<39x256xbf16>
    %cst_15 = arith.constant dense<0.000000e+00> : vector<16x256xf32>
    %25 = tpu.matmul %22, %24, %cst_15 {dimension_numbers = #tpu.dot_dimension_numbers<[1], [0], [0], [1], [0, 0, 1, 1], [], []>} : vector<16x39xbf16>, vector<39x256xbf16>, vector<16x256xf32> -> vector<16x256xf32>
    %26 = arith.addf %20, %25 : vector<16x256xf32>
    %27 = vector.extract_strided_slice %1 {offsets = [4, 0], sizes = [16, 39], strides = [1, 1]} : vector<24x39xf32> to vector<16x39xf32>
    %28 = arith.truncf %27 : vector<16x39xf32> to vector<16x39xbf16>
    %c4 = arith.constant 4 : index
    %c0_16 = arith.constant 0 : index
    %c0_17 = arith.constant 0 : index
    %29 = vector.load %arg3[%c4, %c0_16, %c0_17] : memref<9x39x256xbf16, #tpu.memory_space<vmem>>, vector<1x39x256xbf16>
    %30 = vector.shape_cast %29 : vector<1x39x256xbf16> to vector<39x256xbf16>
    %cst_18 = arith.constant dense<0.000000e+00> : vector<16x256xf32>
    %31 = tpu.matmul %28, %30, %cst_18 {dimension_numbers = #tpu.dot_dimension_numbers<[1], [0], [0], [1], [0, 0, 1, 1], [], []>} : vector<16x39xbf16>, vector<39x256xbf16>, vector<16x256xf32> -> vector<16x256xf32>
    %32 = arith.addf %26, %31 : vector<16x256xf32>
    %33 = vector.extract_strided_slice %1 {offsets = [5, 0], sizes = [16, 39], strides = [1, 1]} : vector<24x39xf32> to vector<16x39xf32>
    %34 = arith.truncf %33 : vector<16x39xf32> to vector<16x39xbf16>
    %c5 = arith.constant 5 : index
    %c0_19 = arith.constant 0 : index
    %c0_20 = arith.constant 0 : index
    %35 = vector.load %arg3[%c5, %c0_19, %c0_20] : memref<9x39x256xbf16, #tpu.memory_space<vmem>>, vector<1x39x256xbf16>
    %36 = vector.shape_cast %35 : vector<1x39x256xbf16> to vector<39x256xbf16>
    %cst_21 = arith.constant dense<0.000000e+00> : vector<16x256xf32>
    %37 = tpu.matmul %34, %36, %cst_21 {dimension_numbers = #tpu.dot_dimension_numbers<[1], [0], [0], [1], [0, 0, 1, 1], [], []>} : vector<16x39xbf16>, vector<39x256xbf16>, vector<16x256xf32> -> vector<16x256xf32>
    %38 = arith.addf %32, %37 : vector<16x256xf32>
    %39 = vector.extract_strided_slice %1 {offsets = [6, 0], sizes = [16, 39], strides = [1, 1]} : vector<24x39xf32> to vector<16x39xf32>
    %40 = arith.truncf %39 : vector<16x39xf32> to vector<16x39xbf16>
    %c6 = arith.constant 6 : index
    %c0_22 = arith.constant 0 : index
    %c0_23 = arith.constant 0 : index
    %41 = vector.load %arg3[%c6, %c0_22, %c0_23] : memref<9x39x256xbf16, #tpu.memory_space<vmem>>, vector<1x39x256xbf16>
    %42 = vector.shape_cast %41 : vector<1x39x256xbf16> to vector<39x256xbf16>
    %cst_24 = arith.constant dense<0.000000e+00> : vector<16x256xf32>
    %43 = tpu.matmul %40, %42, %cst_24 {dimension_numbers = #tpu.dot_dimension_numbers<[1], [0], [0], [1], [0, 0, 1, 1], [], []>} : vector<16x39xbf16>, vector<39x256xbf16>, vector<16x256xf32> -> vector<16x256xf32>
    %44 = arith.addf %38, %43 : vector<16x256xf32>
    %45 = vector.extract_strided_slice %1 {offsets = [7, 0], sizes = [16, 39], strides = [1, 1]} : vector<24x39xf32> to vector<16x39xf32>
    %46 = arith.truncf %45 : vector<16x39xf32> to vector<16x39xbf16>
    %c7 = arith.constant 7 : index
    %c0_25 = arith.constant 0 : index
    %c0_26 = arith.constant 0 : index
    %47 = vector.load %arg3[%c7, %c0_25, %c0_26] : memref<9x39x256xbf16, #tpu.memory_space<vmem>>, vector<1x39x256xbf16>
    %48 = vector.shape_cast %47 : vector<1x39x256xbf16> to vector<39x256xbf16>
    %cst_27 = arith.constant dense<0.000000e+00> : vector<16x256xf32>
    %49 = tpu.matmul %46, %48, %cst_27 {dimension_numbers = #tpu.dot_dimension_numbers<[1], [0], [0], [1], [0, 0, 1, 1], [], []>} : vector<16x39xbf16>, vector<39x256xbf16>, vector<16x256xf32> -> vector<16x256xf32>
    %50 = arith.addf %44, %49 : vector<16x256xf32>
    %51 = vector.extract_strided_slice %1 {offsets = [8, 0], sizes = [16, 39], strides = [1, 1]} : vector<24x39xf32> to vector<16x39xf32>
    %52 = arith.truncf %51 : vector<16x39xf32> to vector<16x39xbf16>
    %c8 = arith.constant 8 : index
    %c0_28 = arith.constant 0 : index
    %c0_29 = arith.constant 0 : index
    %53 = vector.load %arg3[%c8, %c0_28, %c0_29] : memref<9x39x256xbf16, #tpu.memory_space<vmem>>, vector<1x39x256xbf16>
    %54 = vector.shape_cast %53 : vector<1x39x256xbf16> to vector<39x256xbf16>
    %cst_30 = arith.constant dense<0.000000e+00> : vector<16x256xf32>
    %55 = tpu.matmul %52, %54, %cst_30 {dimension_numbers = #tpu.dot_dimension_numbers<[1], [0], [0], [1], [0, 0, 1, 1], [], []>} : vector<16x39xbf16>, vector<39x256xbf16>, vector<16x256xf32> -> vector<16x256xf32>
    %56 = arith.addf %50, %55 : vector<16x256xf32>
    %c0_31 = arith.constant 0 : index
    %c0_32 = arith.constant 0 : index
    %57 = vector.load %arg4[%c0_31, %c0_32] : memref<1x256xf32, #tpu.memory_space<vmem>>, vector<1x256xf32>
    %58 = vector.broadcast %57 : vector<1x256xf32> to vector<16x256xf32>
    %59 = arith.addf %56, %58 : vector<16x256xf32>
    %cst_33 = arith.constant 0.000000e+00 : f32
    %60 = vector.broadcast %cst_33 : f32 to vector<16x256xf32>
    %61 = arith.maximumf %59, %60 : vector<16x256xf32>
    %62 = arith.truncf %61 : vector<16x256xf32> to vector<16x256xbf16>
    %c0_34 = arith.constant 0 : index
    %c0_35 = arith.constant 0 : index
    %63 = vector.load %arg5[%c0_34, %c0_35] : memref<256x128xbf16, #tpu.memory_space<vmem>>, vector<256x128xbf16>
    %cst_36 = arith.constant dense<0.000000e+00> : vector<16x128xf32>
    %64 = tpu.matmul %62, %63, %cst_36 {dimension_numbers = #tpu.dot_dimension_numbers<[1], [0], [0], [1], [0, 0, 1, 1], [], []>} : vector<16x256xbf16>, vector<256x128xbf16>, vector<16x128xf32> -> vector<16x128xf32>
    %c0_37 = arith.constant 0 : index
    %c0_38 = arith.constant 0 : index
    %65 = vector.load %arg6[%c0_37, %c0_38] : memref<1x128xf32, #tpu.memory_space<vmem>>, vector<1x128xf32>
    %66 = vector.broadcast %65 : vector<1x128xf32> to vector<16x128xf32>
    %67 = arith.addf %64, %66 : vector<16x128xf32>
    %cst_39 = arith.constant 0.000000e+00 : f32
    %68 = vector.broadcast %cst_39 : f32 to vector<16x128xf32>
    %69 = arith.maximumf %67, %68 : vector<16x128xf32>
    %70 = arith.truncf %69 : vector<16x128xf32> to vector<16x128xbf16>
    %c0_40 = arith.constant 0 : index
    %c0_41 = arith.constant 0 : index
    %71 = vector.load %arg7[%c0_40, %c0_41] : memref<128x128xbf16, #tpu.memory_space<vmem>>, vector<128x128xbf16>
    %cst_42 = arith.constant dense<0.000000e+00> : vector<16x128xf32>
    %72 = tpu.matmul %70, %71, %cst_42 {dimension_numbers = #tpu.dot_dimension_numbers<[1], [0], [0], [1], [0, 0, 1, 1], [], []>} : vector<16x128xbf16>, vector<128x128xbf16>, vector<16x128xf32> -> vector<16x128xf32>
    %c0_43 = arith.constant 0 : index
    %c0_44 = arith.constant 0 : index
    %73 = vector.load %arg8[%c0_43, %c0_44] : memref<1x128xf32, #tpu.memory_space<vmem>>, vector<1x128xf32>
    %74 = vector.broadcast %73 : vector<1x128xf32> to vector<16x128xf32>
    %75 = arith.addf %72, %74 : vector<16x128xf32>
    %c0_45 = arith.constant 0 : index
    %c0_46 = arith.constant 0 : index
    %c0_47 = arith.constant 0 : index
    %76 = vector.load %arg9[%c0_45, %c0_46, %c0_47] : memref<1x16x128xf32, #tpu.memory_space<vmem>>, vector<1x16x128xf32>
    %77 = vector.shape_cast %76 : vector<1x16x128xf32> to vector<16x128xf32>
    %78 = vector.shape_cast %75 : vector<16x128xf32> to vector<1x16x128xf32>
    tpu.vector_store %arg9[%c0_45, %c0_46, %c0_47], %78 {strides = array<i32>} : memref<1x16x128xf32, #tpu.memory_space<vmem>>, vector<1x16x128xf32>,
    return
  }
  func.func @transform_0(%arg0: i32, %arg1: i32) -> (i32, i32, i32, i32) {
    %c0_i32 = arith.constant 0 : i32
    %c0_i32_0 = arith.constant 0 : i32
    %c0_i32_1 = arith.constant 0 : i32
    return %arg0, %arg1, %c0_i32, %c0_i32_0 : i32, i32, i32, i32
  }
  func.func @transform_1(%arg0: i32, %arg1: i32) -> (i32, i32, i32) {
    %c0_i32 = arith.constant 0 : i32
    %c0_i32_0 = arith.constant 0 : i32
    %c0_i32_1 = arith.constant 0 : i32
    %c0_i32_2 = arith.constant 0 : i32
    return %c0_i32, %c0_i32_0, %c0_i32_1 : i32, i32, i32
  }
  func.func @transform_2(%arg0: i32, %arg1: i32) -> (i32, i32) {
    %c0_i32 = arith.constant 0 : i32
    %c0_i32_0 = arith.constant 0 : i32
    %c0_i32_1 = arith.constant 0 : i32
    return %c0_i32, %c0_i32_0 : i32, i32
  }
  func.func @transform_3(%arg0: i32, %arg1: i32) -> (i32, i32) {
    %c0_i32 = arith.constant 0 : i32
    %c0_i32_0 = arith.constant 0 : i32
    %c0_i32_1 = arith.constant 0 : i32
    return %c0_i32, %c0_i32_0 : i32, i32
  }
  func.func @transform_4(%arg0: i32, %arg1: i32) -> (i32, i32) {
    %c0_i32 = arith.constant 0 : i32
    %c0_i32_0 = arith.constant 0 : i32
    %c0_i32_1 = arith.constant 0 : i32
    return %c0_i32, %c0_i32_0 : i32, i32
  }
  func.func @transform_5(%arg0: i32, %arg1: i32) -> (i32, i32) {
    %c0_i32 = arith.constant 0 : i32
    %c0_i32_0 = arith.constant 0 : i32
    %c0_i32_1 = arith.constant 0 : i32
    return %c0_i32, %c0_i32_0 : i32, i32
  }
  func.func @transform_6(%arg0: i32, %arg1: i32) -> (i32, i32) {
    %c0_i32 = arith.constant 0 : i32
    %c0_i32_0 = arith.constant 0 : i32
    %c0_i32_1 = arith.constant 0 : i32
    return %c0_i32, %c0_i32_0 : i32, i32
  }
  func.func @transform_7(%arg0: i32, %arg1: i32) -> (i32, i32, i32) {
    %c0_i32 = arith.constant 0 : i32
    %c0_i32_0 = arith.constant 0 : i32
    return %arg0, %arg1, %c0_i32 : i32, i32, i32
  }
}

</mosaic_0001>

<bundles_post_ra>
// kernel: reverse
= control target key start
LH: loop header
LB: loop body
LE: loop exit
PB: predicated region body
PF: predicated region fallthrough
CT: control target
= control target key end

     0   :  { %v2_v0 = vlaneseq  ;;  %s311_s0 = inlined_call_operand.vmem [shape: f32[2,256], index: 0, kind: input, shape index: {}]   ;;  %s312_s1 = inlined_call_operand.vmem [shape: f32[2,256], index: 1, kind: output, shape index: {}]  }
   0x2   :  { %v3_v1 = vsub.s32 127, %v2_v0 }
   0x4   :  { %4 = vset.pattern.permute.xlu0 %v3_v1 }
   0x5   :  { %s271_s6 = smov 0   ;;  %s273_s7 = smov 0  }
   0x6   :  { %s275_s8 = smov 0  }
   0x7 LB: > { %s201_s9 = sadd.s32 4294967295, %s259_s8   ;;  %s19_s10 = sadd.s32 1, %s255_s7  ;;  %s259_s8 = sphi %s275_s8, %s10_s8   ;;  %s255_s7 = sphi %s273_s7, %s314_s7   ;;  %s251_s6 = sphi %s271_s6, %s313_s6  }
   0x8   : > { %p20_p0 = scmp.ge.s32.totalorder %s19_s10, 2  ;;  %p203_p1 = scmp.ge.s32.totalorder %s259_s8, 2 }
   0x9   : > { %s38_s11 = sand.u32 (!%p203_p1), 1, %s259_s8   ;;  %s41_s12 = ssub.s32 (!%p203_p1), 1, %s255_s7 }
   0xa   : > { %s316_s10 = smov (%p20_p0, %s19_s10), 0  ;;  %36 = sbr.rel (%p203_p1) target bundleno = 17 (0x11), region = 16 }
   0xb   : > { %s204_s13 = sshll.u32 (!%p203_p1), %s38_s11, 1  ;;  %s205_s14 = sshll.u32 (!%p203_p1), %s41_s12, 1 }
   0xc   : > { %s45_s17 = scalar_lea.vmem (!%p203_p1), %s311_s0, %s205_s14  ;;  %s40_s18 = scalar_lea.vmem (!%p203_p1), [#allocation1], %s204_s13 }
   0xd   : > { %v61_v2 = vld [vmem:[%s45_s17] sm:$0x3] (!%p203_p1) }
   0xe   : > { %62 = vst [vmem:[%s40_s18] sm:$0x3] (!%p203_p1), %v61_v2 }
  0x11 PF: > { %p206_p2 = scmp.ge.s32.totalorder %s259_s8, 1  ;;  %p78_p3 = scmp.lt.s32.totalorder %s259_s8, 3 }
  0x13   : > { %p79_p4 = pnand %p206_p2, %p78_p3 }
  0x14   : > { %s89_s19 = sand.u32 (!%p79_p4), 1, %s201_s9   ;;  %s210_s23 = sshll.u32 (!%p79_p4), %s251_s6, 1 }
  0x15   : > { %82 = sbr.rel (%p79_p4) target bundleno = 177 (0xb1), region = 50  ;;  %s207_s20 = sshll.u32 (!%p79_p4), %s89_s19, 1 }
  0x16   : > { %s91_s21 = scalar_lea.vmem (!%p79_p4), [#allocation1], %s207_s20  ;;  %s95_s22 = scalar_lea.vmem (!%p79_p4), [#allocation3], %s207_s20 }
  0x17   : > { %v98_v3 = vld [vmem:[%s91_s21] sm:$0x3] (!%p79_p4)  ;;  %s118_s26 = scalar_lea.vmem (!%p79_p4), %s312_s1, %s210_s23 }
  0x18   : > { %99 = vst [vmem:[#allocation0] sm:$0x3] (!%p79_p4), %v98_v3 }
  0x1f   : > { %v101_v4 = vld [vmem:[#allocation0] sm:$0xff] }
  0x20   : > { %102 = vperm.xlu0 %4, %v101_v4  }
  0x9f   : > { %v103_v5 = vpop.permute.xlu0 %102 }
  0xa0   : > { %104 = vst [vmem:[#allocation2] sm:$0xff] %v103_v5 }
  0xa7   : > { %v108_v6 = vld [vmem:[#allocation2] sm:$0x3] }
  0xa8   : > { %110 = vst [vmem:[%s95_s22] sm:$0x3] %v108_v6 }
  0xaf   : > { %v134_v7 = vld [vmem:[%s95_s22] sm:$0x3] }
  0xb0   : > { %135 = vst [vmem:[%s118_s26] sm:$0x3] %v134_v7 }
  0xb1 PF: > { %s10_s8 = sadd.s32 1, %s259_s8   ;;  %s313_s6 = smov %s255_s7 }
  0xb2   : > { %p7_p5 = scmp.ge.s32.totalorder %s10_s8, 4   ;;  %s314_s7 = smov %s316_s10 }
  0xb4   :  { %9 = sbr.rel (!%p7_p5) target bundleno = 7 (0x7), region = 110 }

// kernel: two_layer_plus_forward.1
= control target key start
LH: loop header
LB: loop body
LE: loop exit
PB: predicated region body
PF: predicated region fallthrough
CT: control target
= control target key end

     0   :  { %s1975_s24 = smov 0   ;;  %s1977_s25 = smov 0   ;;  %s2321_s0 = inlined_call_operand.vmem [shape: f32[2,1,24,39], index: 0, kind: input, shape index: {}]   ;;  %s2322_s1 = inlined_call_operand.vmem [shape: bf16[9,39,256], index: 1, kind: input, shape index: {}]   ;;  %s2323_s2 = inlined_call_operand.vmem [shape: f32[1,256], index: 2, kind: input, shape index: {}]   ;;  %s2324_s3 = inlined_call_operand.vmem [shape: bf16[256,128], index: 3, kind: input, shape index: {}]   ;;  %s2325_s4 = inlined_call_operand.vmem [shape: f32[1,128], index: 4, kind: input, shape index: {}]   ;;  %s2326_s5 = inlined_call_operand.vmem [shape: bf16[128,128], index: 5, kind: input, shape index: {}]   ;;  %s2327_s6 = inlined_call_operand.vmem [shape: f32[1,128], index: 6, kind: input, shape index: {}]   ;;  %s2328_s7 = inlined_call_operand.vmem [shape: f32[2,16,128], index: 7, kind: output, shape index: {}]  }
   0x1   :  { %s1979_s26 = smov 0  }
   0x2 LB: > { %s29_s27 = sadd.s32 1, %s1925_s25  ;;  %p1563_p0 = scmp.ge.s32.totalorder %s1929_s26, 1  ;;  %s1929_s26 = sphi %s1979_s26, %s17_s26   ;;  %s1925_s25 = sphi %s1977_s25, %s2330_s25   ;;  %s1921_s24 = sphi %s1975_s24, %s2329_s24  }
   0x3   : > { %p31_p1 = scmp.ge.s32.totalorder %s29_s27, 2  ;;  %p257_p2 = scmp.lt.s32.totalorder %s1929_s26, 3 }
   0x5   : > { %s2332_s27 = smov (%p31_p1, %s29_s27), 0  ;;  %p258_p3 = pnand %p1563_p0, %p257_p2 }
   0x6   : > { %v1811_v0 = vld [vmem:[%s2322_s1 + $0x54] ss:$8 sps:$4 sm:$0xff] (!%p258_p3)   ;;  %vm375_vm0 = vcmask (!%p258_p3), 1042432   ;;  %vm376_vm1 = vcmask (!%p258_p3), 1043456   ;;  %v1813_v1 = vld [vmem:[%s2322_s1 + $0x50] ss:$8 sps:$4 sm:$0xff] (!%p258_p3)  }
   0x7   : > { %261 = sbr.rel (%p258_p3) target bundleno = 760 (0x2f8), region = 48  ;;  %550 = vmatprep.subr.bf16.mxu0 (!%p258_p3), %v1811_v0  ;;  %v1814_v2 = vld [vmem:[%s2322_s1 + $0x64] ss:$8 sps:$4 sm:$0xff] (!%p258_p3)   ;;  %v1816_v3 = vld [vmem:[%s2322_s1 + $0x60] ss:$8 sps:$4 sm:$0xff] (!%p258_p3)   ;;  %v1931_v4 = vmov (!%p258_p3), 65535  }
   0x8   : > { %v377_v5 = vsel (!%p258_p3), %vm375_vm0, 4294967295, %v1931_v4  ;;  %v1590_v6 = vld [vmem:[%s2322_s1 + $0x70] sm:$0xff] (!%p258_p3)  ;;  %v1932_v7 = vmov (!%p258_p3), 0   ;;  %551 = vmatpush1.bf16.msra.mxu0 (!%p258_p3), %v1813_v1  ;;  %p297_p4 = scmp.lt.s32.totalorder (!%p258_p3), %s1921_s24, 1  ;;  %v1821_v13 = vld [vmem:[%s2322_s1 + $0x7c] ss:$8 sps:$4 sm:$0xff] (!%p258_p3)  }
   0x9   : > { %582 = vmatprep.mubr.bf16.mxu0 (!%p258_p3), %v1932_v7  ;;  %v2011_v8 = vsel (!%p258_p3), %vm376_vm1, %v377_v5, 0  ;;  %v1596_v9 = vcombine.high (!%p258_p3), %v1590_v6, %v1590_v6  ;;  %v1595_v10 = vcombine.low (!%p258_p3), %v1590_v6, %v1590_v6  ;;  %417 = vmatprep.mubr.bf16.mxu1 (!%p258_p3), %v1932_v7  ;;  %v1602_v19 = vld [vmem:[%s2322_s1 + $0x98] sm:$0xff] (!%p258_p3)  ;;  %vm371_vm2 = vcmask (!%p258_p3), 318464   ;;  %v1824_v26 = vld [vmem:[%s2322_s1 + $0x8c] ss:$8 sps:$4 sm:$0xff] (!%p258_p3)   ;;  %v1614_v50 = vld [vmem:[%s2322_s1 + $0xc0] sm:$0xff] (!%p258_p3) }
   0xa   : > { %552 = vmatprep.subr.bf16.mxu0 (!%p258_p3), %v1814_v2  ;;  %vm512_vm3 = vcmask (!%p258_p3), 1046528   ;;  %v1819_v20 = vld [vmem:[%s2322_s1 + $0x78] ss:$8 sps:$4 sm:$0xff] (!%p258_p3)   ;;  %v1608_v27 = vcombine.high (!%p258_p3), %v1602_v19, %v1602_v19  ;;  %v1843_v30 = vld [vmem:[%s2322_s1 + $0x2c] ss:$8 sps:$4 sm:$0xff] (!%p258_p3)   ;;  %v1607_v36 = vcombine.low (!%p258_p3), %v1602_v19, %v1602_v19  ;;  %v1620_v60 = vcombine.high (!%p258_p3), %v1614_v50, %v1614_v50 }
   0xb   : > { %v548_v11 = vand.u32 (!%p258_p3), %v1596_v9, %v2011_v8  ;;  %v545_v12 = vand.u32 (!%p258_p3), %v1595_v10, %v2011_v8  ;;  %v1845_v32 = vld [vmem:[%s2322_s1 + $0x28] ss:$8 sps:$4 sm:$0xff] (!%p258_p3)   ;;  %385 = vmatprep.subr.bf16.mxu1 (!%p258_p3), %v1843_v30  ;;  %v1849_v39 = vld [vmem:[%s2322_s1 + $0x3c] ss:$8 sps:$4 sm:$0xff] (!%p258_p3)   ;;  %v1851_v41 = vld [vmem:[%s2322_s1 + $0x38] ss:$8 sps:$4 sm:$0xff] (!%p258_p3)   ;;  %v1619_v2 = vcombine.low (!%p258_p3), %v1614_v50, %v1614_v50 }
   0xc   : > { %553 = vmatpush1.bf16.msra.mxu0 (!%p258_p3), %v1816_v3  ;;  %v1822_v33 = vld [vmem:[%s2322_s1 + $0x88] ss:$8 sps:$4 sm:$0xff] (!%p258_p3)   ;;  %v645_v40 = vand.u32 (!%p258_p3), %v1608_v27, %v2011_v8  ;;  %386 = vmatpush1.bf16.msra.mxu1 (!%p258_p3), %v1845_v32  ;;  %v642_v46 = vand.u32 (!%p258_p3), %v1607_v36, %v2011_v8  ;;  %vm603_vm4 = vsmask.f32 (!%p258_p3), 6400  ;;  %v1829_v49 = vld [vmem:[%s2322_s1 + $0xa4] ss:$8 sps:$4 sm:$0xff] (!%p258_p3)   ;;  %v736_v5 = vand.u32 (!%p258_p3), %v1620_v60, %v2011_v8 }
   0xd   : > { %554 = vmatprep.subr.bf16.mxu0 (!%p258_p3), %v548_v11  ;;  %387 = vmatprep.subr.bf16.mxu1 (!%p258_p3), %v1849_v39  ;;  %v1571_v42 = vld [vmem:[%s2322_s1 + $0x48] sm:$0xff] (!%p258_p3)  ;;  %vm333_vm5 = vsmask.f32 (!%p258_p3), 7424  ;;  %v325_v58 = vld [vmem:[%s2322_s1 + $0x20] sm:$0xff] (!%p258_p3)  ;;  %v1832_v59 = vld [vmem:[%s2322_s1 + $0xb4] ss:$8 sps:$4 sm:$0xff] (!%p258_p3)  }
   0xe   : > { %s2334_s24 = smov (!%p297_p4, %s1921_s24), 1  ;;  %v1577_v44 = vcombine.high %v1571_v42, %v1571_v42  ;;  %v1576_v45 = vcombine.low %v1571_v42, %v1571_v42  ;;  %v1861_v55 = vld [vmem:[%s2322_s1 + $0x4] ss:$8 sps:$4 sm:$0xff]   ;;  %v1827_v57 = vld [vmem:[%s2322_s1 + $0xa0] ss:$8 sps:$4 sm:$0xff]   ;;  %vm700_vm6 = vcmask 1045504   ;;  %v1584_v1 = vcombine.high %v325_v58, %v325_v58 }
   0xf   : > { %s1782_s15 = smul.u32 24, %s2334_s24  ;;  %v1859_v62 = vld [vmem:[%s2322_s1] ss:$8 sps:$4 sm:$0xff]   ;;  %v1830_v63 = vld [vmem:[%s2322_s1 + $0xb0] ss:$8 sps:$4 sm:$0xff]   ;;  %v1583_v11 = vcombine.low %v325_v58, %v325_v58  ;;  %vm886_vm8 = vcmask 1044480  }
  0x10   : > { %555 = vmatpush1.bf16.msra.mxu0 %v545_v12  ;;  %388 = vmatpush1.bf16.msra.mxu1 %v1851_v41  ;;  %v383_v51 = vand.u32 %v1577_v44, %v2011_v8  ;;  %v380_v52 = vand.u32 %v1576_v45, %v2011_v8  ;;  %v1867_v0 = vld [vmem:[%s2322_s1 + $0x14] ss:$8 sps:$4 sm:$0xff]   ;;  %v1865_v10 = vld [vmem:[%s2322_s1 + $0x10] ss:$8 sps:$4 sm:$0xff]   ;;  %v459_v19 = vand.u32 %v1584_v1, %v2011_v8  ;;  %v1884_v32 = vld [vmem:[%s2324_s3] sm:$0xff]   ;;  %vm1934_vm10 = vmmov 0  }
  0x11   : > { %s305_s20 = scalar_lea.vmem %s2321_s0, %s1782_s15  ;;  %647 = vmatprep.subr.bf16.mxu0 %v1821_v13  ;;  %v1837_v12 = vld [vmem:[%s2322_s1 + $0xcc] ss:$8 sps:$4 sm:$0xff]   ;;  %v456_v27 = vand.u32 %v1583_v11, %v2011_v8  ;;  %v1840_v30 = vld [vmem:[%s2322_s1 + $0xdc] ss:$8 sps:$4 sm:$0xff]   ;;  %vm791_vm7 = vsmask.f32 5376 }
  0x12   : > { %v317_v14 = vld [vmem:[%s305_s20] sm:$0xff]  ;;  %v2027_v15 = vld [vmem:[%s305_s20 + $0x8] sm:$0xff]  ;;  %v2029_v16 = vld [vmem:[%s305_s20 + $0x10] sm:$0xff]  ;;  %389 = vmatprep.subr.bf16.mxu1 %v383_v51  ;;  %vm977_vm9 = vsmask.f32 4352  ;;  %s1698_s18 = sshll.u32 %s2334_s24, 4 }
  0x13   : > { %v2032_v17 = vpack.c.bf16 %v2027_v15, %v317_v14  ;;  %v2036_v18 = vpack.c.bf16 %v2029_v16, %v2029_v16  ;;  %v1066_v21 = vpack.c.bf16 %v2029_v16, %v2027_v15  ;;  %v1848_v41 = vld [vmem:[%s2322_s1 + $0xf4] ss:$8 sps:$4 sm:$0xff]   ;;  %v1846_v44 = vld [vmem:[%s2322_s1 + $0xf0] ss:$8 sps:$4 sm:$0xff]   ;;  %v1854_v45 = vld [vmem:[%s2322_s1 + $0x104] ss:$8 sps:$4 sm:$0xff]   ;;  %s314_s23 = scalar_lea.vmem %s2328_s7, %s1698_s18 }
  0x14   : > { %390 = vmatpush1.bf16.msra.mxu1 %v380_v52  ;;  %v1638_v42 = vld [vmem:[%s2322_s1 + $0x110] sm:$0xff]  ;;  %v1886_v11 = vld [vmem:[%s2324_s3 + $0x8] sm:$0xff]   ;;  %v1890_v15 = vld [vmem:[%s2324_s3 + $0x18] sm:$0xff]  }
  0x15   : > { %v513_v22 = vrot.slane %v2032_v17, 1  ;;  %v514_v23 = vrot.slane %v2036_v18, 1  ;;  %v2049_v24 = vshrl.u32 %v2032_v17, 16  ;;  %v2052_v25 = vshll.u32 %v2032_v17, 16  ;;  %461 = vmatprep.subr.bf16.mxu1 %v1861_v55  ;;  %v1868_v58 = vld [vmem:[%s2322_s1 + $0x128] ss:$8 sps:$4 sm:$0xff]  }
  0x16   : > { %v2058_v28 = vshll.u32 %v2036_v18, 16  ;;  %v2061_v29 = vshrl.u32 %v2036_v18, 16  ;;  %v701_v3 = vrot.slane %v2032_v17, 2  ;;  %v702_v4 = vrot.slane %v2036_v18, 2  ;;  %v1891_v16 = vld [vmem:[%s2324_s3 + $0x60] sm:$0xff]  }
  0x17   : > { %v515_v31 = vsel %vm512_vm3, %v513_v22, %v514_v23  ;;  %v604_v34 = vrot.slane %v2049_v24, 1  ;;  %v605_v35 = vrot.slane %v2052_v25, 2  ;;  %v339_v43 = vrot.slane %v2052_v25, 1  ;;  %v1626_v22 = vld [vmem:[%s2322_s1 + $0xe8] sm:$0xff]  ;;  %v1883_v23 = vld [vmem:[%s2324_s3 + $0x40] sm:$0xff]  }
  0x18   : > { %1597 = vmatmul.mubr.msk.bf16.vlgmr.msra.gmra.mrb[0].mxu0 %vm371_vm2, %v515_v31  ;;  %v609_v37 = vrot.slane %v2061_v29, 1  ;;  %v610_v38 = vrot.slane %v2058_v28, 2  ;;  %v344_v54 = vrot.slane %v2058_v28, 1  ;;  %v792_v6 = vrot.slane %v2049_v24, 2 }
  0x19   : > { %648 = vmatpush1.bf16.msra.mxu0 %v1819_v20  ;;  %679 = vmatprep.mubr.bf16.mxu0 %v1932_v7  ;;  %v606_v47 = vor.u32 %v605_v35, %v604_v34  ;;  %v340_v53 = vor.u32 %v339_v43, %v2049_v24  ;;  %v793_v9 = vrot.slane %v2052_v25, 3  ;;  %v795_v13 = vrot.slane %v2061_v29, 2  ;;  %v1885_v34 = vld [vmem:[%s2324_s3 + $0x48] sm:$0xff]   ;;  %v1838_v35 = vld [vmem:[%s2322_s1 + $0xd8] ss:$8 sps:$4 sm:$0xff]  }
  0x1a   : > { %649 = vmatprep.subr.bf16.mxu0 %v1824_v26  ;;  %v611_v48 = vor.u32 %v610_v38, %v609_v37  ;;  %v796_v14 = vrot.slane %v2058_v28, 3  ;;  %v733_v20 = vand.u32 %v1619_v2, %v2011_v8  ;;  %v1835_v26 = vld [vmem:[%s2322_s1 + $0xc8] ss:$8 sps:$4 sm:$0xff]   ;;  %v703_v31 = vsel %vm700_vm6, %v701_v3, %v702_v4  ;;  %v1877_v2 = vld [vmem:[%s2322_s1 + $0x144] ss:$8 sps:$4 sm:$0xff]  }
  0x1b   : > { %v345_v61 = vsel %vm333_vm5, %v340_v53, %v344_v54  ;;  %v1631_v36 = vcombine.low %v1626_v22, %v1626_v22  ;;  %v794_v39 = vor.u32 %v793_v9, %v792_v6  ;;  %v887_v51 = vrot.slane %v2032_v17, 3  ;;  %v1864_v53 = vld [vmem:[%s2322_s1 + $0x11c] ss:$8 sps:$4 sm:$0xff]  }
  0x1c   : > { %v612_v56 = vsel %vm603_vm4, %v606_v47, %v611_v48  ;;  %1578 = vmatmul.mubr.msk.bf16.vlgmr.msra.gmra.mrb[0].mxu1 %vm371_vm2, %v345_v61  ;;  %v1852_v47 = vld [vmem:[%s2322_s1 + $0x100] ss:$8 sps:$4 sm:$0xff]   ;;  %v1643_v48 = vcombine.low %v1638_v42, %v1638_v42  ;;  %v888_v52 = vrot.slane %v2036_v18, 3  ;;  %v1650_v54 = vld [vmem:[%s2322_s1 + $0x138] sm:$0xff]  ;;  %v979_v60 = vrot.slane %v2052_v25, 4 }
  0x1d   : > { %650 = vmatpush1.bf16.msra.mxu0 %v1822_v33  ;;  %462 = vmatpush1.bf16.msra.mxu1 %v1859_v62  ;;  %v1632_v33 = vcombine.high %v1626_v22, %v1626_v22  ;;  %v828_v38 = vand.u32 %v1631_v36, %v2011_v8  ;;  %v1656_v18 = vcombine.high %v1650_v54, %v1650_v54  ;;  %v981_v61 = vrot.slane %v2061_v29, 3  ;;  %v1662_v25 = vld [vmem:[%s2322_s1 + $0x160] sm:$0xff]  ;;  %v1880_v3 = vld [vmem:[%s2322_s1 + $0x154] ss:$8 sps:$4 sm:$0xff]  }
  0x1e   : > { %651 = vmatprep.subr.bf16.mxu0 %v645_v40  ;;  %493 = vmatprep.mubr.bf16.mxu1 %v1932_v7  ;;  %v797_v40 = vor.u32 %v796_v14, %v795_v13  ;;  %v919_v50 = vand.u32 %v1643_v48, %v2011_v8  ;;  %v889_v55 = vsel %vm886_vm8, %v887_v51, %v888_v52  ;;  %v982_v62 = vrot.slane %v2058_v28, 4  ;;  %v1875_v29 = vld [vmem:[%s2322_s1 + $0x140] ss:$8 sps:$4 sm:$0xff]   ;;  %v1897_v22 = vld [vmem:[%s2324_s3 + $0x78] sm:$0xff]  }
  0x1f   : > { %463 = vmatprep.subr.bf16.mxu1 %v1867_v0  ;;  %v831_v37 = vand.u32 %v1632_v33, %v2011_v8  ;;  %v1668_v4 = vcombine.high %v1662_v25, %v1662_v25  ;;  %v1667_v6 = vcombine.low %v1662_v25, %v1662_v25  ;;  %v1893_v13 = vld [vmem:[%s2324_s3 + $0x68] sm:$0xff]   ;;  %v1156_v33 = vlaneseq  ;;  %v1154_v36 = vld [vmem:[%s2323_s2] sm:$0x3] }
  0x20   : > { %v798_v43 = vsel %vm791_vm7, %v794_v39, %v797_v40  ;;  %v983_v1 = vor.u32 %v982_v62, %v981_v61  ;;  %v1894_v14 = vld [vmem:[%s2324_s3 + $0x28] sm:$0xff]   ;;  %v1905_v62 = vld [vmem:[%s2326_s5 + $0x30] sm:$0xff]  }
  0x21   : > { %652 = vmatpush1.bf16.msra.mxu0 %v642_v46  ;;  %464 = vmatpush1.bf16.msra.mxu1 %v1865_v10  ;;  %v1644_v46 = vcombine.high %v1638_v42, %v1638_v42  ;;  %v1105_v9 = vand.u32 %v1668_v4, %v2011_v8  ;;  %v1102_v10 = vand.u32 %v1667_v6, %v2011_v8  ;;  %v1904_v61 = vld [vmem:[%s2326_s5 + $0x28] sm:$0xff]  }
  0x22   : > { %738 = vmatprep.subr.bf16.mxu0 %v1829_v49  ;;  %465 = vmatprep.subr.bf16.mxu1 %v459_v19  ;;  %v1895_v19 = vld [vmem:[%s2324_s3 + $0x70] sm:$0xff]  }
  0x23   : > { %v922_v49 = vand.u32 %v1644_v46, %v2011_v8 }
  0x24   : > { %1609 = vmatmul.mubr.msk.bf16.vlgmr.msra.gmra.mrb[0].mxu0 %vm371_vm2, %v612_v56  ;;  %v1862_v56 = vld [vmem:[%s2322_s1 + $0x118] ss:$8 sps:$4 sm:$0xff]  }
  0x25   : > { %739 = vmatpush1.bf16.msra.mxu0 %v1827_v57  ;;  %770 = vmatprep.mubr.bf16.mxu0 %v1932_v7  ;;  %v978_v57 = vrot.slane %v2049_v24, 3 }
  0x26   : > { %740 = vmatprep.subr.bf16.mxu0 %v1832_v59  ;;  %466 = vmatpush1.bf16.msra.mxu1 %v456_v27  ;;  %v1655_v59 = vcombine.low %v1650_v54, %v1650_v54 }
  0x27   : > { %1699 = vmatprep.subr.bf16.mxu1 %v1883_v23  ;;  %v980_v0 = vor.u32 %v979_v60, %v978_v57  ;;  %v1898_v23 = vld [vmem:[%s2324_s3 + $0x38] sm:$0xff]   ;;  %v1900_v57 = vld [vmem:[%s2326_s5 + $0x8] sm:$0xff]   ;;  %v1903_v60 = vld [vmem:[%s2326_s5 + $0x20] sm:$0xff]  }
  0x28   : > { %v1014_v24 = vand.u32 %v1655_v59, %v2011_v8  ;;  %v1902_v59 = vld [vmem:[%s2326_s5 + $0x18] sm:$0xff]  }
  0x29   : > { %741 = vmatpush1.bf16.msra.mxu0 %v1830_v63  ;;  %1585 = vmatmul.mubr.msk.bf16.vlgmr.msra.gmra.mrb[0].mxu1 %vm371_vm2, %v2032_v17  ;;  %v1870_v17 = vld [vmem:[%s2322_s1 + $0x12c] ss:$8 sps:$4 sm:$0xff]   ;;  %v1017_v63 = vand.u32 %v1656_v18, %v2011_v8  ;;  %v984_v28 = vsel %vm977_vm9, %v980_v0, %v983_v1  ;;  %v1899_v18 = vld [vmem:[%s2326_s5] sm:$0xff]  }
  0x2a   : > { %742 = vmatprep.subr.bf16.mxu0 %v736_v5  ;;  %1700 = vmatpush3.bf16.msra.mxu1 %v1884_v32  ;;  %v1878_v5 = vld [vmem:[%s2322_s1 + $0x150] ss:$8 sps:$4 sm:$0xff]   ;;  %v1670_v0 = vld [vmem:[%s2325_s4] ss:$0 sm:$0xff] }
  0x2b   : > { %1701 = vmatprep.subr.bf16.mxu1 %v1885_v34  ;;  %v1888_v8 = vld [vmem:[%s2324_s3 + $0x10] sm:$0xff]   ;;  %v1157_v34 = vshrl.u32 %v1156_v33, 7 }
  0x2d   : > { %743 = vmatpush1.bf16.msra.mxu0 %v733_v20  ;;  %v1896_v20 = vld [vmem:[%s2324_s3 + $0x30] sm:$0xff]  }
  0x2e   : > { %833 = vmatprep.subr.bf16.mxu0 %v1837_v12  ;;  %1702 = vmatpush3.bf16.msra.mxu1 %v1886_v11  ;;  %v1889_v12 = vld [vmem:[%s2324_s3 + $0x58] sm:$0xff]  }
  0x30   : > { %1621 = vmatmul.mubr.msk.bf16.vlgmr.msra.gmra.mrb[0].mxu0 %vm371_vm2, %v703_v31 }
  0x31   : > { %834 = vmatpush1.bf16.msra.mxu0 %v1835_v26  ;;  %865 = vmatprep.mubr.bf16.mxu0 %v1932_v7  ;;  %v1933_v26 = vmov 0.0  }
  0x32   : > { %835 = vmatprep.subr.bf16.mxu0 %v1840_v30 }
  0x35   : > { %836 = vmatpush1.bf16.msra.mxu0 %v1838_v35  ;;  %v1158_v35 = vsub.s32 0, %v1157_v34 }
  0x36   : > { %837 = vmatprep.subr.bf16.mxu0 %v831_v37  ;;  %v1162_v37 = vsub.s32 1, %v1157_v34 }
  0x38   : > { %v1163_v40 = vrot.slane %v1154_v36, %v1162_v37 }
  0x39   : > { %838 = vmatpush1.bf16.msra.mxu0 %v828_v38  ;;  %v1159_v38 = vrot.slane %v1154_v36, %v1158_v35 }
  0x3a   : > { %924 = vmatprep.subr.bf16.mxu0 %v1848_v41 }
  0x3c   : > { %1633 = vmatmul.mubr.msk.bf16.vlgmr.msra.gmra.mrb[0].mxu0 %vm371_vm2, %v798_v43 }
  0x3d   : > { %925 = vmatpush1.bf16.msra.mxu0 %v1846_v44  ;;  %956 = vmatprep.mubr.bf16.mxu0 %v1932_v7 }
  0x3e   : > { %926 = vmatprep.subr.bf16.mxu0 %v1854_v45 }
  0x41   : > { %927 = vmatpush1.bf16.msra.mxu0 %v1852_v47 }
  0x42   : > { %928 = vmatprep.subr.bf16.mxu0 %v922_v49 }
  0x45   : > { %929 = vmatpush1.bf16.msra.mxu0 %v919_v50 }
  0x46   : > { %1019 = vmatprep.subr.bf16.mxu0 %v1864_v53 }
  0x48   : > { %1645 = vmatmul.mubr.msk.bf16.vlgmr.msra.gmra.mrb[0].mxu0 %vm371_vm2, %v889_v55 }
  0x49   : > { %1020 = vmatpush1.bf16.msra.mxu0 %v1862_v56  ;;  %1051 = vmatprep.mubr.bf16.mxu0 %v1932_v7 }
  0x4a   : > { %1021 = vmatprep.subr.bf16.mxu0 %v1870_v17 }
  0x4d   : > { %1022 = vmatpush1.bf16.msra.mxu0 %v1868_v58  ;;  %v1901_v58 = vld [vmem:[%s2326_s5 + $0x10] sm:$0xff]  }
  0x4e   : > { %1023 = vmatprep.subr.bf16.mxu0 %v1017_v63  ;;  %v1906_v63 = vld [vmem:[%s2326_s5 + $0x38] sm:$0xff]  }
  0x51   : > { %1024 = vmatpush1.bf16.msra.mxu0 %v1014_v24 }
  0x52   : > { %1107 = vmatprep.subr.bf16.mxu0 %v1877_v2 }
  0x54   : > { %1657 = vmatmul.mubr.msk.bf16.vlgmr.msra.gmra.mrb[0].mxu0 %vm371_vm2, %v984_v28 }
  0x55   : > { %1108 = vmatpush1.bf16.msra.mxu0 %v1875_v29  ;;  %1139 = vmatprep.mubr.bf16.mxu0 %v1932_v7  ;;  %v1887_v7 = vld [vmem:[%s2324_s3 + $0x50] sm:$0xff]  }
  0x56   : > { %1109 = vmatprep.subr.bf16.mxu0 %v1880_v3  ;;  %1703 = vmatprep.subr.bf16.mxu1 %v1887_v7 }
  0x57   : > { %1704 = vmatpush3.bf16.msra.mxu1 %v1888_v8 }
  0x58   : > { %1705 = vmatprep.subr.bf16.mxu1 %v1889_v12 }
  0x59   : > { %1110 = vmatpush1.bf16.msra.mxu0 %v1878_v5 }
  0x5a   : > { %1111 = vmatprep.subr.bf16.mxu0 %v1105_v9 }
  0x5b   : > { %1706 = vmatpush3.bf16.msra.mxu1 %v1890_v15 }
  0x5c   : > { %1707 = vmatprep.subr.bf16.mxu1 %v1891_v16 }
  0x5d   : > { %1112 = vmatpush1.bf16.msra.mxu0 %v1102_v10  ;;  %v1687_v10 = vld [vmem:[%s2327_s6] ss:$0 sm:$0xff] }
  0x60   : > { %1669 = vmatmul.mubr.msk.bf16.vlgmr.msra.gmra.mrb[0].mxu0 %vm371_vm2, %v1066_v21  ;;  %v1892_v21 = vld [vmem:[%s2324_s3 + $0x20] sm:$0xff]  }
  0x61   : > { %1708 = vmatpush3.bf16.msra.mxu1 %v1892_v21 }
  0x62   : > { %1709 = vmatprep.subr.bf16.mxu1 %v1893_v13 }
  0x65   : > { %1710 = vmatpush3.bf16.msra.mxu1 %v1894_v14 }
  0x66   : > { %1711 = vmatprep.subr.bf16.mxu1 %v1895_v19 }
  0x69   : > { %1712 = vmatpush3.bf16.msra.mxu1 %v1896_v20 }
  0x6a   : > { %1713 = vmatprep.subr.bf16.mxu1 %v1897_v22 }
  0x6d   : > { %1714 = vmatpush3.bf16.msra.mxu1 %v1898_v23 }
  0x6e   : > { %1730 = vmatprep.subr.bf16.mxu1 %v1933_v26 }
  0xfc   : > { %v495_v27 = vpop.f32.mrb[0].mxu1 }
  0xfd   : > { %v497_v30 = vpop.f32.mrb[1].mxu1 }
  0xfe   : > { %v499_v31 = vpop.f32.mrb[2].mxu1 }
  0xff   : > { %v501_v32 = vpop.f32.mrb[3].mxu1 }
 0x133   : > { %v1141_v39 = vpop.f32.mrb[0].mxu0 }
 0x134   : > { %v1750_v41 = vadd.f32 %v1141_v39, %v495_v27  ;;  %v1143_v42 = vpop.f32.mrb[1].mxu0 }
 0x135   : > { %v1751_v43 = vadd.f32 %v1143_v42, %v497_v30  ;;  %v1145_v44 = vpop.f32.mrb[2].mxu0 }
 0x136   : > { %v1166_v45 = vadd.f32 %v1750_v41, %v1159_v38  ;;  %v1752_v46 = vadd.f32 %v1145_v44, %v499_v31  ;;  %v1147_v47 = vpop.f32.mrb[3].mxu0 }
 0x137   : > { %v1167_v48 = vadd.f32 %v1751_v43, %v1163_v40  ;;  %v1753_v49 = vadd.f32 %v1147_v47, %v501_v32 }
 0x138   : > { %v1168_v50 = vadd.f32 %v1752_v46, %v1159_v38  ;;  %v1170_v52 = vmax.f32 %v1166_v45, 0.0 }
 0x139   : > { %v1169_v51 = vadd.f32 %v1753_v49, %v1163_v40  ;;  %v1171_v54 = vmax.f32 %v1167_v48, 0.0 }
 0x13a   : > { %v1172_v53 = vmax.f32 %v1168_v50, 0.0 }
 0x13b   : > { %v1173_v55 = vmax.f32 %v1169_v51, 0.0 }
 0x13c   : > { %v1174_v56 = vpack.c.bf16 %v1172_v53, %v1170_v52 }
 0x13d   : > { %v1175_v17 = vpack.c.bf16 %v1173_v55, %v1171_v54 }
 0x13f   : > { %1343 = vmatprep.mubr.bf16.mxu1 %v1175_v17 }
 0x140   : > { %1344 = vmatmul.mubr.bf16.vlgmr.msra.gmra.mrb[4].mxu1 %v1174_v56 }
 0x141   : > { %1731 = vmatpush3.bf16.msra.mxu1 %v1899_v18  ;;  %1746 = vmatprep.mubr.msk.bf16.mxu1 %vm1934_vm10, %v1933_v26 }
 0x142   : > { %1732 = vmatprep.subr.bf16.mxu1 %v1933_v26 }
 0x145   : > { %1733 = vmatpush3.bf16.msra.mxu1 %v1900_v57 }
 0x146   : > { %1734 = vmatprep.subr.bf16.mxu1 %v1933_v26 }
 0x149   : > { %1735 = vmatpush3.bf16.msra.mxu1 %v1901_v58 }
 0x14a   : > { %1736 = vmatprep.subr.bf16.mxu1 %v1933_v26 }
 0x14d   : > { %1737 = vmatpush3.bf16.msra.mxu1 %v1902_v59 }
 0x14e   : > { %1738 = vmatprep.subr.bf16.mxu1 %v1933_v26 }
 0x151   : > { %1739 = vmatpush3.bf16.msra.mxu1 %v1903_v60 }
 0x152   : > { %1740 = vmatprep.subr.bf16.mxu1 %v1933_v26 }
 0x155   : > { %1741 = vmatpush3.bf16.msra.mxu1 %v1904_v61 }
 0x156   : > { %1742 = vmatprep.subr.bf16.mxu1 %v1933_v26 }
 0x159   : > { %1743 = vmatpush3.bf16.msra.mxu1 %v1905_v62 }
 0x15a   : > { %1744 = vmatprep.subr.bf16.mxu1 %v1933_v26 }
 0x15d   : > { %1745 = vmatpush3.bf16.msra.mxu1 %v1906_v63 }
 0x213   : > { %v1715_v24 = vpop.f32.mrb[4].mxu1 }
 0x214   : > { %v1716_v1 = vpop.f32.mrb[5].mxu1 }
 0x215   : > { %v1717_v2 = vadd.f32 %v1716_v1, %v1715_v24  ;;  %v1718_v25 = vpop.f32.mrb[6].mxu1 }
 0x216   : > { %v1719_v28 = vpop.f32.mrb[7].mxu1 }
 0x217   : > { %v1346_v29 = vadd.f32 %v1717_v2, %v1670_v0  ;;  %v1720_v3 = vadd.f32 %v1719_v28, %v1718_v25 }
 0x219   : > { %v1349_v4 = vadd.f32 %v1720_v3, %v1670_v0  ;;  %v1352_v5 = vmax.f32 %v1346_v29, 0.0 }
 0x21b   : > { %v1353_v6 = vmax.f32 %v1349_v4, 0.0 }
 0x21d   : > { %v1354_v9 = vpack.c.bf16 %v1353_v6, %v1352_v5 }
 0x21f   : > { %1747 = vmatmul.mubr.bf16.vlgmr.msra.gmra.mrb[8].mxu1 %v1354_v9 }
 0x2f2   : > { %v1460_v11 = vpop.f32.mrb[8].mxu1 }
 0x2f3   : > { %v1461_v7 = vadd.f32 %v1687_v10, %v1460_v11  ;;  %v1748_v8 = vpop.f32.mrb[9].mxu1 }
 0x2f4   : > { %v1463_v12 = vpop.f32.mrb[10].mxu1 }
 0x2f5   : > { %1467 = vst [vmem:[%s314_s23] sm:$0xff] %v1461_v7  ;;  %v1464_v15 = vadd.f32 %v1687_v10, %v1463_v12  ;;  %v1749_v16 = vpop.f32.mrb[11].mxu1 }
 0x2f7   : > { %1468 = vst [vmem:[%s314_s23 + $0x8] sm:$0xff] %v1464_v15 }
 0x2f8 PF: > { %s17_s26 = sadd.s32 1, %s1929_s26   ;;  %s2329_s24 = smov %s1925_s25 }
 0x2f9   : > { %p14_p5 = scmp.ge.s32.totalorder %s17_s26, 4   ;;  %s2330_s25 = smov %s2332_s27 }
 0x2fb   :  { %16 = sbr.rel (!%p14_p5) target bundleno = 2 (0x2), region = 86 }

</bundles_post_ra>
